<compile_context>
chip_gen: v7x
topology: tpu7x:2x2x1
jax: 0.10.0
libtpu: 0.0.40
codegen_flags: <defaults>
</compile_context>

<pallas_src>
import math

import jax
import jax.numpy as jnp
from jax.experimental import pallas as pl
from jax.experimental.pallas import tpu as pltpu

HIDDEN_L1 = 400          # first hidden layer (logical)
HIDDEN_L2 = 200          # per-head hidden layer (logical)
PAD_H1 = 512             # padded first hidden width   (400 -> 512)
PAD_H2 = 512             # padded fused head width (2*200=400 -> 512)
MIN_OUT_PAD = 128        # lane-dense output width


def _round_up(n, m):
    return ((n + m - 1) // m) * m


def _make_actor_kernel(n_action):
    """Kernel closure over the (static, python int) action dimension."""

    def kernel(
        x_ref,            # (TB, In)          f32
        w1_ref, b1_ref,   # (In, 512)  bf16,  (1, 512) f32
        w2_ref, b2_ref,   # (512, 512) bf16,  (1, 512) f32   ([w2a | w2b] padded)
        w3_ref, b3_ref,   # (512, 128) bf16,  (1, 128) f32   (block-diag, padded)
        out_ref,          # (TB, 128)         f32  (cols [0:A] tanh, [A:2A] sigmoid)
    ):
        # Layer 1 + ReLU (bf16 MXU inputs, f32 accumulate, f32 elementwise).
        x = x_ref[...].astype(jnp.bfloat16)
        l1 = jnp.dot(x, w1_ref[...], preferred_element_type=jnp.float32) + b1_ref[...]
        l1 = jnp.maximum(l1, 0.0)

        # Fused per-head hidden layer: [h1 | h2 | 0] = ReLU(l1 @ [w2a|w2b|0] + b2)
        h = jnp.dot(l1.astype(jnp.bfloat16), w2_ref[...],
                    preferred_element_type=jnp.float32) + b2_ref[...]
        h = jnp.maximum(h, 0.0)

        # Fused output layer (block-diagonal, zero-padded to 128 lanes).
        o = jnp.dot(h.astype(jnp.bfloat16), w3_ref[...],
                    preferred_element_type=jnp.float32) + b3_ref[...]

        # Epilogue: tanh head on cols [0:A], sigmoid head on cols [A:2A] via the
        # identity sigmoid(o) = 0.5 * tanh(0.5 * o) + 0.5  -> a single EUP tanh
        # over column-scaled logits plus one VPU FMA. Padding columns are 0.5
        # and get sliced off in the wrapper.
        col = jax.lax.broadcasted_iota(jnp.int32, o.shape, 1)
        is_tanh = col < n_action
        scale = jnp.where(is_tanh, 1.0, 0.5)
        offset = jnp.where(is_tanh, 0.0, 0.5)
        out_ref[...] = (jnp.tanh(o * scale) * scale + offset).astype(out_ref.dtype)

    return kernel


def pack_params(params, mxu_dtype=jnp.bfloat16):
    """Fuse per-head weights, zero-pad to MXU/lane-aligned shapes, cast to bf16.

    w1: (In,400)->(In,512);  w2 = [w2a|w2b] padded to (512,512);
    w3 = blockdiag(w3a,w3b) padded to (512,128).  Padding is exact (zeros
    propagate through ReLU as zeros).  Biases stay f32."""
    in_dim, h1 = params["w1"].shape
    h2, a = params["w3a"].shape
    out_pad = max(MIN_OUT_PAD, _round_up(2 * a, 128))

    w1 = jnp.zeros((in_dim, PAD_H1), jnp.float32).at[:, :h1].set(params["w1"])
    b1 = jnp.zeros((1, PAD_H1), jnp.float32).at[:, :h1].set(params["b1"])

    w2 = jnp.zeros((PAD_H1, PAD_H2), jnp.float32)
    w2 = w2.at[:h1, :h2].set(params["w2a"]).at[:h1, h2:2 * h2].set(params["w2b"])
    b2 = jnp.zeros((1, PAD_H2), jnp.float32)
    b2 = b2.at[:, :h2].set(params["b2a"]).at[:, h2:2 * h2].set(params["b2b"])

    w3 = jnp.zeros((PAD_H2, out_pad), jnp.float32)
    w3 = w3.at[:h2, :a].set(params["w3a"]).at[h2:2 * h2, a:2 * a].set(params["w3b"])
    b3 = jnp.zeros((1, out_pad), jnp.float32)
    b3 = b3.at[:, :a].set(params["b3a"]).at[:, a:2 * a].set(params["b3b"])

    return dict(
        w1=w1.astype(mxu_dtype), b1=b1,
        w2=w2.astype(mxu_dtype), b2=b2,
        w3=w3.astype(mxu_dtype), b3=b3,
        n_action=a,                      # static python int (not traced)
    )


def actor_forward(x, packed, *, block_b=1024):
    """x: (B, input_size) f32.  packed: output of pack_params.
    Returns (tanh_head (B, A), sigmoid_head (B, A))."""
    B, in_dim = x.shape
    a = packed["n_action"]
    out_pad = packed["w3"].shape[1]

    # ---- Batch tiling --------------------------------------------------
    # Pad B to a multiple of 8; for B >= 16 aim for >= 2 grid steps (so the
    # two v7x TensorCores can split the batch), capped at block_b rows/tile.
    b8 = _round_up(max(B, 1), 8)
    if b8 < 16:
        tb = b8
    else:
        tb = min(block_b, _round_up(b8 // 2, 8))
    b_pad = _round_up(b8, tb)
    if b_pad != B:
        x = jnp.pad(x, ((0, b_pad - B), (0, 0)))
    grid = (b_pad // tb,)

    def batch_map(i):
        return (i, 0)

    def const_map(i):
        return (0, 0)

    # Weights/biases never change block index -> keep them VMEM-resident and
    # single-buffered (default double-buffering would just duplicate them).
    resident = pl.Buffered(buffer_count=1)

    in_specs = [
        pl.BlockSpec((tb, in_dim), batch_map),                          # activations
        pl.BlockSpec(packed["w1"].shape, const_map, pipeline_mode=resident),
        pl.BlockSpec(packed["b1"].shape, const_map, pipeline_mode=resident),
        pl.BlockSpec(packed["w2"].shape, const_map, pipeline_mode=resident),
        pl.BlockSpec(packed["b2"].shape, const_map, pipeline_mode=resident),
        pl.BlockSpec(packed["w3"].shape, const_map, pipeline_mode=resident),
        pl.BlockSpec(packed["b3"].shape, const_map, pipeline_mode=resident),
    ]
    out_spec = pl.BlockSpec((tb, out_pad), batch_map)                   # lane-dense

    out = pl.pallas_call(
        _make_actor_kernel(a),
        out_shape=jax.ShapeDtypeStruct((b_pad, out_pad), jnp.float32),
        grid=grid,
        in_specs=in_specs,
        out_specs=out_spec,
        compiler_params=pltpu.CompilerParams(
            dimension_semantics=("parallel",),       # megacore-shardable batch axis
            vmem_limit_bytes=32 * 1024 * 1024,       # headroom on v5e's 16 MiB default
        ),
    )(x, packed["w1"], packed["b1"], packed["w2"], packed["b2"],
      packed["w3"], packed["b3"])

    return out[:B, :a], out[:B, a:2 * a]


def init_params(key, input_size, n_action):
    """Match nn.Linear's default U(-1/sqrt(fan_in), 1/sqrt(fan_in)) init.
    Weights stored transposed relative to PyTorch: (in_features, out_features)."""
    def linear(k, fan_in, fan_out):
        kw, kb = jax.random.split(k)
        bound = 1.0 / math.sqrt(fan_in)
        w = jax.random.uniform(kw, (fan_in, fan_out), jnp.float32, -bound, bound)
        b = jax.random.uniform(kb, (1, fan_out), jnp.float32, -bound, bound)
        return w, b

    keys = jax.random.split(key, 5)
    w1, b1 = linear(keys[0], input_size, HIDDEN_L1)
    w2a, b2a = linear(keys[1], HIDDEN_L1, HIDDEN_L2)
    w2b, b2b = linear(keys[2], HIDDEN_L1, HIDDEN_L2)
    w3a, b3a = linear(keys[3], HIDDEN_L2, n_action)
    w3b, b3b = linear(keys[4], HIDDEN_L2, n_action)
    return dict(w1=w1, b1=b1, w2a=w2a, b2a=b2a, w2b=w2b, b2b=b2b,
                w3a=w3a, b3a=b3a, w3b=w3b, b3b=b3b)


def actor_forward_ref(x, p):
    """Pure-f32 JAX reference (unfused, matches the PyTorch module exactly)."""
    l1 = jnp.maximum(x @ p["w1"] + p["b1"], 0.0)
    h1 = jnp.maximum(l1 @ p["w2a"] + p["b2a"], 0.0)
    h2 = jnp.maximum(l1 @ p["w2b"] + p["b2b"], 0.0)
    o1 = jnp.tanh(h1 @ p["w3a"] + p["b3a"])
    o2 = jax.nn.sigmoid(h2 @ p["w3b"] + p["b3b"])
    return o1, o2


if __name__ == "__main__":
    # Shapes implied by the module docstring: state dim 8, action dim 2.
    input_size, n_action = 8, 2

    key = jax.random.PRNGKey(0)
    k_params, k_x1, k_x2 = jax.random.split(key, 3)
    params = init_params(k_params, input_size, n_action)
    packed = pack_params(params)

    # Small batch (B=2): padded to one 8-row tile, grid of 1.
    x_small = jax.random.normal(k_x1, (2, input_size), jnp.float32)
    o1, o2 = actor_forward(x_small, packed)
    jax.block_until_ready((o1, o2))
    r1, r2 = actor_forward_ref(x_small, params)
    assert o1.shape == (2, n_action) and o2.shape == (2, n_action)
    # bf16 MXU inputs with f32 accumulation vs pure-f32 reference -> loose tol.
    assert jnp.allclose(o1, r1, atol=2e-2), "head1 mismatch (B=2)"
    assert jnp.allclose(o2, r2, atol=2e-2), "head2 mismatch (B=2)"

    # Non-divisible batch (B=260): exercises batch padding (260 -> 272), two
    # 136-row parallel tiles (v7x dual-TC path), VMEM-resident weights.
    x_big = jax.random.normal(k_x2, (260, input_size), jnp.float32)
    o1b, o2b = actor_forward(x_big, packed)
    jax.block_until_ready((o1b, o2b))
    r1b, r2b = actor_forward_ref(x_big, params)
    assert o1b.shape == (260, n_action) and o2b.shape == (260, n_action)
    assert jnp.allclose(o1b, r1b, atol=2e-2), "head1 mismatch (B=260)"
    assert jnp.allclose(o2b, r2b, atol=2e-2), "head2 mismatch (B=260)"

    print("KERNEL_OK")
</pallas_src>

<mosaic_0001>
module attributes {stable_mosaic.version = 11 : i64} {
  func.func @kernel(%arg0: i32, %arg1: memref<8x8xf32, #tpu.memory_space<vmem>>, %arg2: memref<8x512xbf16, #tpu.memory_space<vmem>>, %arg3: memref<1x512xf32, #tpu.memory_space<vmem>>, %arg4: memref<512x512xbf16, #tpu.memory_space<vmem>>, %arg5: memref<1x512xf32, #tpu.memory_space<vmem>>, %arg6: memref<512x128xbf16, #tpu.memory_space<vmem>>, %arg7: memref<1x128xf32, #tpu.memory_space<vmem>>, %arg8: memref<8x128xf32, #tpu.memory_space<vmem>>) attributes {dimension_semantics = [#tpu.dimension_semantics<parallel>], iteration_bounds = array<i64: 1>, scalar_prefetch = 0 : i64, scratch_operands = 0 : i64, tpu.core_type = #tpu.core_type<tc>, window_params = [{transform_indices = @transform_0, window_bounds = array<i64: 8, 8>}, {pipeline_mode = #tpu.pipeline_mode<synchronous>, transform_indices = @transform_1, window_bounds = array<i64: 8, 512>}, {pipeline_mode = #tpu.pipeline_mode<synchronous>, transform_indices = @transform_2, window_bounds = array<i64: 1, 512>}, {pipeline_mode = #tpu.pipeline_mode<synchronous>, transform_indices = @transform_3, window_bounds = array<i64: 512, 512>}, {pipeline_mode = #tpu.pipeline_mode<synchronous>, transform_indices = @transform_4, window_bounds = array<i64: 1, 512>}, {pipeline_mode = #tpu.pipeline_mode<synchronous>, transform_indices = @transform_5, window_bounds = array<i64: 512, 128>}, {pipeline_mode = #tpu.pipeline_mode<synchronous>, transform_indices = @transform_6, window_bounds = array<i64: 1, 128>}, {transform_indices = @transform_7, window_bounds = array<i64: 8, 128>}]} {
    %c0 = arith.constant 0 : index
    %c0_0 = arith.constant 0 : index
    %0 = vector.load %arg1[%c0, %c0_0] : memref<8x8xf32, #tpu.memory_space<vmem>>, vector<8x8xf32>
    %1 = arith.truncf %0 : vector<8x8xf32> to vector<8x8xbf16>
    %c0_1 = arith.constant 0 : index
    %c0_2 = arith.constant 0 : index
    %2 = vector.load %arg2[%c0_1, %c0_2] : memref<8x512xbf16, #tpu.memory_space<vmem>>, vector<8x512xbf16>
    %cst = arith.constant dense<0.000000e+00> : vector<8x512xf32>
    %3 = tpu.matmul %1, %2, %cst {dimension_numbers = #tpu.dot_dimension_numbers<[1], [0], [0], [1], [0, 0, 1, 1], [], []>} : vector<8x8xbf16>, vector<8x512xbf16>, vector<8x512xf32> -> vector<8x512xf32>
    %c0_3 = arith.constant 0 : index
    %c0_4 = arith.constant 0 : index
    %4 = vector.load %arg3[%c0_3, %c0_4] : memref<1x512xf32, #tpu.memory_space<vmem>>, vector<1x512xf32>
    %5 = vector.broadcast %4 : vector<1x512xf32> to vector<8x512xf32>
    %6 = arith.addf %3, %5 : vector<8x512xf32>
    %cst_5 = arith.constant 0.000000e+00 : f32
    %7 = vector.broadcast %cst_5 : f32 to vector<8x512xf32>
    %8 = arith.maximumf %6, %7 : vector<8x512xf32>
    %9 = arith.truncf %8 : vector<8x512xf32> to vector<8x512xbf16>
    %c0_6 = arith.constant 0 : index
    %c0_7 = arith.constant 0 : index
    %10 = vector.load %arg4[%c0_6, %c0_7] : memref<512x512xbf16, #tpu.memory_space<vmem>>, vector<512x512xbf16>
    %cst_8 = arith.constant dense<0.000000e+00> : vector<8x512xf32>
    %11 = tpu.matmul %9, %10, %cst_8 {dimension_numbers = #tpu.dot_dimension_numbers<[1], [0], [0], [1], [0, 0, 1, 1], [], []>} : vector<8x512xbf16>, vector<512x512xbf16>, vector<8x512xf32> -> vector<8x512xf32>
    %c0_9 = arith.constant 0 : index
    %c0_10 = arith.constant 0 : index
    %12 = vector.load %arg5[%c0_9, %c0_10] : memref<1x512xf32, #tpu.memory_space<vmem>>, vector<1x512xf32>
    %13 = vector.broadcast %12 : vector<1x512xf32> to vector<8x512xf32>
    %14 = arith.addf %11, %13 : vector<8x512xf32>
    %cst_11 = arith.constant 0.000000e+00 : f32
    %15 = vector.broadcast %cst_11 : f32 to vector<8x512xf32>
    %16 = arith.maximumf %14, %15 : vector<8x512xf32>
    %17 = arith.truncf %16 : vector<8x512xf32> to vector<8x512xbf16>
    %c0_12 = arith.constant 0 : index
    %c0_13 = arith.constant 0 : index
    %18 = vector.load %arg6[%c0_12, %c0_13] : memref<512x128xbf16, #tpu.memory_space<vmem>>, vector<512x128xbf16>
    %cst_14 = arith.constant dense<0.000000e+00> : vector<8x128xf32>
    %19 = tpu.matmul %17, %18, %cst_14 {dimension_numbers = #tpu.dot_dimension_numbers<[1], [0], [0], [1], [0, 0, 1, 1], [], []>} : vector<8x512xbf16>, vector<512x128xbf16>, vector<8x128xf32> -> vector<8x128xf32>
    %c0_15 = arith.constant 0 : index
    %c0_16 = arith.constant 0 : index
    %20 = vector.load %arg7[%c0_15, %c0_16] : memref<1x128xf32, #tpu.memory_space<vmem>>, vector<1x128xf32>
    %21 = vector.broadcast %20 : vector<1x128xf32> to vector<8x128xf32>
    %22 = arith.addf %19, %21 : vector<8x128xf32>
    %23 = tpu.iota {dimensions = array<i32: 1>} : vector<8x128xi32>
    %c2_i32 = arith.constant 2 : i32
    %24 = vector.broadcast %c2_i32 : i32 to vector<8x128xi32>
    %25 = arith.cmpi slt, %23, %24 : vector<8x128xi32>
    %cst_17 = arith.constant 1.000000e+00 : f32
    %cst_18 = arith.constant 5.000000e-01 : f32
    %26 = vector.broadcast %cst_17 : f32 to vector<8x128xf32>
    %27 = vector.broadcast %cst_18 : f32 to vector<8x128xf32>
    %28 = arith.select %25, %26, %27 : vector<8x128xi1>, vector<8x128xf32>
    %cst_19 = arith.constant 0.000000e+00 : f32
    %cst_20 = arith.constant 5.000000e-01 : f32
    %29 = vector.broadcast %cst_19 : f32 to vector<8x128xf32>
    %30 = vector.broadcast %cst_20 : f32 to vector<8x128xf32>
    %31 = arith.select %25, %29, %30 : vector<8x128xi1>, vector<8x128xf32>
    %32 = arith.mulf %22, %28 : vector<8x128xf32>
    %33 = math.tanh %32 : vector<8x128xf32>
    %34 = arith.mulf %33, %28 : vector<8x128xf32>
    %35 = arith.addf %34, %31 : vector<8x128xf32>
    %c0_21 = arith.constant 0 : index
    %c0_22 = arith.constant 0 : index
    %36 = vector.load %arg8[%c0_21, %c0_22] : memref<8x128xf32, #tpu.memory_space<vmem>>, vector<8x128xf32>
    tpu.vector_store %arg8[%c0_21, %c0_22], %35 {strides = array<i32>} : memref<8x128xf32, #tpu.memory_space<vmem>>, vector<8x128xf32>,
    return
  }
  func.func @transform_0(%arg0: i32) -> (i32, i32) {
    %c0_i32 = arith.constant 0 : i32
    %c0_i32_0 = arith.constant 0 : i32
    return %arg0, %c0_i32 : i32, i32
  }
  func.func @transform_1(%arg0: i32) -> (i32, i32) {
    %c0_i32 = arith.constant 0 : i32
    %c0_i32_0 = arith.constant 0 : i32
    %c0_i32_1 = arith.constant 0 : i32
    return %c0_i32, %c0_i32_0 : i32, i32
  }
  func.func @transform_2(%arg0: i32) -> (i32, i32) {
    %c0_i32 = arith.constant 0 : i32
    %c0_i32_0 = arith.constant 0 : i32
    %c0_i32_1 = arith.constant 0 : i32
    return %c0_i32, %c0_i32_0 : i32, i32
  }
  func.func @transform_3(%arg0: i32) -> (i32, i32) {
    %c0_i32 = arith.constant 0 : i32
    %c0_i32_0 = arith.constant 0 : i32
    %c0_i32_1 = arith.constant 0 : i32
    return %c0_i32, %c0_i32_0 : i32, i32
  }
  func.func @transform_4(%arg0: i32) -> (i32, i32) {
    %c0_i32 = arith.constant 0 : i32
    %c0_i32_0 = arith.constant 0 : i32
    %c0_i32_1 = arith.constant 0 : i32
    return %c0_i32, %c0_i32_0 : i32, i32
  }
  func.func @transform_5(%arg0: i32) -> (i32, i32) {
    %c0_i32 = arith.constant 0 : i32
    %c0_i32_0 = arith.constant 0 : i32
    %c0_i32_1 = arith.constant 0 : i32
    return %c0_i32, %c0_i32_0 : i32, i32
  }
  func.func @transform_6(%arg0: i32) -> (i32, i32) {
    %c0_i32 = arith.constant 0 : i32
    %c0_i32_0 = arith.constant 0 : i32
    %c0_i32_1 = arith.constant 0 : i32
    return %c0_i32, %c0_i32_0 : i32, i32
  }
  func.func @transform_7(%arg0: i32) -> (i32, i32) {
    %c0_i32 = arith.constant 0 : i32
    %c0_i32_0 = arith.constant 0 : i32
    return %arg0, %c0_i32 : i32, i32
  }
}

</mosaic_0001>

<bundles_post_ra>
// kernel: tpu_custom_call.1
= control target key start
LH: loop header
LB: loop body
LE: loop exit
PB: predicated region body
PF: predicated region fallthrough
CT: control target
= control target key end

     0   :  { %12 = vsyncpa [#allocation3], 0  ;;  %s2291_s0 = inlined_call_operand.hbm [shape: f32[8,8], index: 0, kind: input, shape index: {}]   ;;  %s2292_s1 = inlined_call_operand.hbm [shape: bf16[8,512], index: 1, kind: input, shape index: {}]   ;;  %s2293_s2 = inlined_call_operand.vmem [shape: f32[1,512], index: 2, kind: input, shape index: {}]   ;;  %s2294_s3 = inlined_call_operand.hbm [shape: bf16[512,512], index: 3, kind: input, shape index: {}]   ;;  %s2295_s4 = inlined_call_operand.vmem [shape: f32[1,512], index: 4, kind: input, shape index: {}]   ;;  %s2296_s5 = inlined_call_operand.hbm [shape: bf16[512,128], index: 5, kind: input, shape index: {}]   ;;  %s2297_s6 = inlined_call_operand.vmem [shape: f32[1,128], index: 6, kind: input, shape index: {}]   ;;  %s2298_s7 = inlined_call_operand.hbm [shape: f32[8,128], index: 7, kind: output, shape index: {}]  }
   0x1   :  { %13 = vsyncpa [#allocation6], 0 }
   0x2   :  { %14 = vsyncpa [#allocation9], 0 }
   0x3   :  { %15 = vsyncpa [#allocation4], 0  ;;  %s2138_s24 = smov [#allocation5]   ;;  %s2139_s26 = smov [#allocation2]  }
   0x4   :  { %s32_s25 = sshll.u32 %s2138_s24, 4  ;;  %s22_s27 = sshll.u32 %s2139_s26, 4  ;;  %s33_s25 = int_to_ptr.vmem [resolvable:$true] %s32_s25  ;;  %s23_s27 = int_to_ptr.vmem [resolvable:$true] %s22_s27 }
   0x5   :  { %s2020_s30 = scalar_lea.hbm %s2292_s1, 256 }
   0x6   :  { %p2021_p0 = scmp.ne.s32.totalorder %s2292_s1, %s2020_s30  ;;  %p2024_p1 = scmp.lt.u32.totalorder %s2020_s30, %s2292_s1 }
   0x8   :  { %p2026_p2 = pnand %p2024_p1, %p2021_p0 }
   0xa   :  { %2029 = shalt.err (!%p2026_p2)
}
   0xb   :  { %s2030_s12 = scalar_lea.vmem %s33_s25, 256  ;;  %p2035_p4 = scmp.lt.s32.totalorder %s33_s25, %s33_s25 }
   0xc   :  { %p2031_p3 = scmp.ne.s32.totalorder %s33_s25, %s2030_s12  ;;  %p2036_p5 = scmp.lt.s32.totalorder %s2030_s12, %s2030_s12 }
   0xe   :  { %p2037_p6 = por %p2036_p5, %p2035_p4 }
  0x10   :  { %p2038_p7 = pnand %p2037_p6, %p2031_p3 }
  0x12   :  { %2041 = shalt.err (!%p2038_p7)
}
  0x13   :  { %35 = dma.hbm_to_vmem [thread:$0]  %s2292_s1, 256, %s33_s25, [#allocation6]  }
  0x14   :  { %s2042_s17 = scalar_lea.hbm %s2291_s0, 128 }
  0x15   :  { %p2043_p8 = scmp.ne.s32.totalorder %s2291_s0, %s2042_s17  ;;  %p2046_p9 = scmp.lt.u32.totalorder %s2042_s17, %s2291_s0 }
  0x17   :  { %p2048_p10 = pnand %p2046_p9, %p2043_p8 }
  0x19   :  { %2051 = shalt.err (!%p2048_p10)
}
  0x1a   :  { %s2052_s22 = scalar_lea.vmem %s23_s27, 128  ;;  %p2057_p12 = scmp.lt.s32.totalorder %s23_s27, %s23_s27 }
  0x1b   :  { %p2053_p11 = scmp.ne.s32.totalorder %s23_s27, %s2052_s22  ;;  %p2058_p13 = scmp.lt.s32.totalorder %s2052_s22, %s2052_s22 }
  0x1d   :  { %p2059_p0 = por %p2058_p13, %p2057_p12 }
  0x1f   :  { %p2060_p1 = pnand %p2059_p0, %p2053_p11 }
  0x21   :  { %2063 = shalt.err (!%p2060_p1)
}
  0x22   :  { %25 = dma.hbm_to_vmem [thread:$0]  %s2291_s0, 128, %s23_s27, [#allocation3]  }
  0x23   :  { %s2140_s24 = smov [#allocation7]   ;;  %s2064_s29 = scalar_lea.hbm %s2294_s3, 16384 }
  0x24   :  { %s43_s25 = sshll.u32 %s2140_s24, 4  ;;  %p2065_p2 = scmp.ne.s32.totalorder %s2294_s3, %s2064_s29  ;;  %s44_s25 = int_to_ptr.vmem [resolvable:$true] %s43_s25 }
  0x25   :  { %p2068_p3 = scmp.lt.u32.totalorder %s2064_s29, %s2294_s3 }
  0x27   :  { %p2070_p4 = pnand %p2068_p3, %p2065_p2 }
  0x29   :  { %2073 = shalt.err (!%p2070_p4)
}
  0x2a   :  { %s2074_s11 = scalar_lea.vmem %s44_s25, 16384  ;;  %p2079_p6 = scmp.lt.s32.totalorder %s44_s25, %s44_s25 }
  0x2b   :  { %p2075_p5 = scmp.ne.s32.totalorder %s44_s25, %s2074_s11  ;;  %p2080_p7 = scmp.lt.s32.totalorder %s2074_s11, %s2074_s11 }
  0x2d   :  { %p2081_p8 = por %p2080_p7, %p2079_p6 }
  0x2f   :  { %p2082_p9 = pnand %p2081_p8, %p2075_p5 }
  0x31   :  { %2085 = shalt.err (!%p2082_p9)
}
  0x32   :  { %s2141_s0 = smov 256   ;;  %s2142_s27 = smov 16  }
  0x33   :  { %49 = dma.hbm_to_vmem [thread:$0]  %s2294_s3, 16384, %s44_s25, [#allocation6], %s2141_s0, %s2141_s0, %s2142_s27  }
  0x34   :  { %s2143_s14 = smov [#allocation8]   ;;  %s2086_s18 = scalar_lea.hbm %s2296_s5, 4096 }
  0x35   :  { %s57_s15 = sshll.u32 %s2143_s14, 4  ;;  %p2087_p10 = scmp.ne.s32.totalorder %s2296_s5, %s2086_s18  ;;  %s58_s15 = int_to_ptr.vmem [resolvable:$true] %s57_s15 }
  0x36   :  { %p2090_p11 = scmp.lt.u32.totalorder %s2086_s18, %s2296_s5 }
  0x38   :  { %p2092_p12 = pnand %p2090_p11, %p2087_p10 }
  0x3a   :  { %2095 = shalt.err (!%p2092_p12)
}
  0x3b   :  { %s2096_s1 = scalar_lea.vmem %s58_s15, 4096  ;;  %p2101_p0 = scmp.lt.s32.totalorder %s58_s15, %s58_s15 }
  0x3c   :  { %p2097_p13 = scmp.ne.s32.totalorder %s58_s15, %s2096_s1  ;;  %p2102_p1 = scmp.lt.s32.totalorder %s2096_s1, %s2096_s1 }
  0x3e   :  { %p2103_p2 = por %p2102_p1, %p2101_p0 }
  0x40   :  { %p2104_p3 = pnand %p2103_p2, %p2097_p13 }
  0x42   :  { %2107 = shalt.err (!%p2104_p3)
}
  0x43   :  { %s2144_s3 = smov 64   ;;  %s2145_s23 = smov 4  }
  0x44   :  { %63 = dma.hbm_to_vmem [thread:$0]  %s2296_s5, 4096, %s58_s15, [#allocation9], %s2144_s3, %s2144_s3, %s2145_s23  }
  0x45   :  { %2130 = dma.done.wait [#allocation3], 128  }
  0x46   :  { %2131 = vsyncadd [#allocation3], 4294967168 }
  0x47   :  { %2132 = dma.done.wait [#allocation6], 16640  }
  0x48   :  { %2133 = vsyncadd [#allocation6], 4294950656 }
  0x49   :  { %2134 = dma.done.wait [#allocation9], 4096  }
  0x4a   :  { %2135 = vsyncadd [#allocation9], 4294963200  ;;  %v2146_v0 = vmov 0   ;;  %v81_v1 = vld [vmem:[#allocation5] sm:$0xff]  ;;  %vm119_vm0 = vcmask 1043456   ;;  %v79_v2 = vld [vmem:[#allocation2] sm:$0xff] }
  0x4b   :  { %164 = vmatprep.mubr.bf16.mxu0 %v2146_v0  ;;  %205 = vmatprep.mubr.bf16.mxu1 %v2146_v0  ;;  %v82_v3 = vld [vmem:[#allocation5 + $0x8] sm:$0xff]  ;;  %v1555_v4 = vcombine.high %v81_v1, %v81_v1  ;;  %v1554_v5 = vcombine.low %v81_v1, %v81_v1  ;;  %v1796_v8 = vld [vmem:[#allocation7 + $0x4] ss:$16 sps:$4 sm:$0xff]   ;;  %v80_v10 = vpack.c.bf16 %v79_v2, %v79_v2  ;;  %vm115_vm1 = vcmask 64512   ;;  %v1794_v13 = vld [vmem:[#allocation7] ss:$16 sps:$4 sm:$0xff]  }
  0x4c   :  { %v1557_v6 = vcombine.high %v82_v3, %v82_v3  ;;  %v1556_v7 = vcombine.low %v82_v3, %v82_v3  ;;  %v1799_v11 = vld [vmem:[#allocation7 + $0xc] ss:$16 sps:$4 sm:$0xff]   ;;  %v1797_v14 = vld [vmem:[#allocation7 + $0x8] ss:$16 sps:$4 sm:$0xff]   ;;  %v1802_v15 = vld [vmem:[#allocation7 + $0x24] ss:$16 sps:$4 sm:$0xff]  }
  0x4d   :  { %1558 = vmatprep.subr.msk.bf16.mxu0 %vm119_vm0, %v1555_v4  ;;  %v121_v9 = vsel %vm119_vm0, %v1554_v5, 0  ;;  %v1805_v16 = vld [vmem:[#allocation7 + $0x2c] ss:$16 sps:$4 sm:$0xff]   ;;  %v1800_v17 = vld [vmem:[#allocation7 + $0x20] ss:$16 sps:$4 sm:$0xff]   ;;  %s2148_s30 = smov [#allocation10]  }
  0x4e   :  { %1560 = vmatprep.subr.msk.bf16.mxu1 %vm119_vm0, %v1557_v6  ;;  %133 = vmatpush1.bf16.msra.mxu0 %v121_v9  ;;  %v127_v12 = vsel %vm119_vm0, %v1556_v7, 0  ;;  %v1803_v18 = vld [vmem:[#allocation7 + $0x28] ss:$16 sps:$4 sm:$0xff]   ;;  %v1808_v19 = vld [vmem:[#allocation7 + $0x44] ss:$16 sps:$4 sm:$0xff]   ;;  %s1543_s8 = sshll.u32 %s2148_s30, 4  ;;  %s1544_s8 = int_to_ptr.vmem [resolvable:$true] %s1543_s8 }
  0x4f   :  { %174 = vmatpush1.bf16.msra.mxu1 %v127_v12  ;;  %1012 = vmatprep.subr.bf16.mxu0 %v1796_v8  ;;  %v1811_v20 = vld [vmem:[#allocation7 + $0x4c] ss:$16 sps:$4 sm:$0xff]   ;;  %v1806_v21 = vld [vmem:[#allocation7 + $0x40] ss:$16 sps:$4 sm:$0xff]   ;;  %v1809_v22 = vld [vmem:[#allocation7 + $0x48] ss:$16 sps:$4 sm:$0xff]   ;;  %p2113_p5 = scmp.lt.s32.totalorder %s1544_s8, %s1544_s8 }
  0x50   :  { %1094 = vmatprep.subr.bf16.mxu1 %v1799_v11  ;;  %v1814_v23 = vld [vmem:[#allocation7 + $0x64] ss:$16 sps:$4 sm:$0xff]   ;;  %v1817_v24 = vld [vmem:[#allocation7 + $0x6c] ss:$16 sps:$4 sm:$0xff]   ;;  %v1812_v25 = vld [vmem:[#allocation7 + $0x60] ss:$16 sps:$4 sm:$0xff]  }
  0x51   :  { %1559 = vmatmul.mubr.msk.bf16.vlgmr.msra.gmra.mrb[0].mxu0 %vm115_vm1, %v80_v10  ;;  %v1815_v26 = vld [vmem:[#allocation7 + $0x68] ss:$16 sps:$4 sm:$0xff]   ;;  %v1820_v27 = vld [vmem:[#allocation7 + $0x84] ss:$16 sps:$4 sm:$0xff]   ;;  %v1823_v28 = vld [vmem:[#allocation7 + $0x8c] ss:$16 sps:$4 sm:$0xff]  }
  0x52   :  { %1561 = vmatmul.mubr.msk.bf16.vlgmr.msra.gmra.mrb[0].mxu1 %vm115_vm1, %v80_v10  ;;  %1013 = vmatpush1.bf16.msra.mxu0 %v1794_v13  ;;  %v1818_v29 = vld [vmem:[#allocation7 + $0x80] ss:$16 sps:$4 sm:$0xff]   ;;  %v1821_v30 = vld [vmem:[#allocation7 + $0x88] ss:$16 sps:$4 sm:$0xff]   ;;  %v1826_v31 = vld [vmem:[#allocation7 + $0xa4] ss:$16 sps:$4 sm:$0xff]   ;;  %v85_v13 = vlaneseq }
  0x53   :  { %1095 = vmatpush1.bf16.msra.mxu1 %v1797_v14  ;;  %1014 = vmatprep.subr.bf16.mxu0 %v1802_v15  ;;  %v1829_v32 = vld [vmem:[#allocation7 + $0xac] ss:$16 sps:$4 sm:$0xff]   ;;  %v1824_v33 = vld [vmem:[#allocation7 + $0xa0] ss:$16 sps:$4 sm:$0xff]   ;;  %v1827_v34 = vld [vmem:[#allocation7 + $0xa8] ss:$16 sps:$4 sm:$0xff]  }
  0x54   :  { %1096 = vmatprep.subr.bf16.mxu1 %v1805_v16  ;;  %v1832_v35 = vld [vmem:[#allocation7 + $0xc4] ss:$16 sps:$4 sm:$0xff]   ;;  %v1835_v36 = vld [vmem:[#allocation7 + $0xcc] ss:$16 sps:$4 sm:$0xff]   ;;  %v1830_v37 = vld [vmem:[#allocation7 + $0xc0] ss:$16 sps:$4 sm:$0xff]  }
  0x55   :  { %v1833_v38 = vld [vmem:[#allocation7 + $0xc8] ss:$16 sps:$4 sm:$0xff]   ;;  %v1838_v39 = vld [vmem:[#allocation7 + $0xe4] ss:$16 sps:$4 sm:$0xff]   ;;  %v1841_v40 = vld [vmem:[#allocation7 + $0xec] ss:$16 sps:$4 sm:$0xff]  }
  0x56   :  { %1015 = vmatpush1.bf16.msra.mxu0 %v1800_v17  ;;  %v1836_v41 = vld [vmem:[#allocation7 + $0xe0] ss:$16 sps:$4 sm:$0xff]   ;;  %v1839_v42 = vld [vmem:[#allocation7 + $0xe8] ss:$16 sps:$4 sm:$0xff]   ;;  %v1844_v43 = vld [vmem:[#allocation7 + $0x104] ss:$16 sps:$4 sm:$0xff]  }
  0x57   :  { %1097 = vmatpush1.bf16.msra.mxu1 %v1803_v18  ;;  %1016 = vmatprep.subr.bf16.mxu0 %v1808_v19  ;;  %v1847_v44 = vld [vmem:[#allocation7 + $0x10c] ss:$16 sps:$4 sm:$0xff]   ;;  %v1842_v45 = vld [vmem:[#allocation7 + $0x100] ss:$16 sps:$4 sm:$0xff]   ;;  %v1845_v46 = vld [vmem:[#allocation7 + $0x108] ss:$16 sps:$4 sm:$0xff]  }
  0x58   :  { %1098 = vmatprep.subr.bf16.mxu1 %v1811_v20  ;;  %v1850_v47 = vld [vmem:[#allocation7 + $0x124] ss:$16 sps:$4 sm:$0xff]   ;;  %v1848_v48 = vld [vmem:[#allocation7 + $0x120] ss:$16 sps:$4 sm:$0xff]   ;;  %v1853_v49 = vld [vmem:[#allocation7 + $0x12c] ss:$16 sps:$4 sm:$0xff]  }
  0x59   :  { %v1851_v50 = vld [vmem:[#allocation7 + $0x128] ss:$16 sps:$4 sm:$0xff]   ;;  %v1856_v51 = vld [vmem:[#allocation7 + $0x144] ss:$16 sps:$4 sm:$0xff]   ;;  %v1859_v52 = vld [vmem:[#allocation7 + $0x14c] ss:$16 sps:$4 sm:$0xff]  }
  0x5a   :  { %1017 = vmatpush1.bf16.msra.mxu0 %v1806_v21  ;;  %v1854_v53 = vld [vmem:[#allocation7 + $0x140] ss:$16 sps:$4 sm:$0xff]   ;;  %v1857_v54 = vld [vmem:[#allocation7 + $0x148] ss:$16 sps:$4 sm:$0xff]   ;;  %v1862_v55 = vld [vmem:[#allocation7 + $0x164] ss:$16 sps:$4 sm:$0xff]  }
  0x5b   :  { %1099 = vmatpush1.bf16.msra.mxu1 %v1809_v22  ;;  %1018 = vmatprep.subr.bf16.mxu0 %v1814_v23  ;;  %v1865_v56 = vld [vmem:[#allocation7 + $0x16c] ss:$16 sps:$4 sm:$0xff]   ;;  %v1860_v57 = vld [vmem:[#allocation7 + $0x160] ss:$16 sps:$4 sm:$0xff]   ;;  %v1863_v58 = vld [vmem:[#allocation7 + $0x168] ss:$16 sps:$4 sm:$0xff]  }
  0x5c   :  { %1100 = vmatprep.subr.bf16.mxu1 %v1817_v24  ;;  %v1868_v59 = vld [vmem:[#allocation7 + $0x184] ss:$16 sps:$4 sm:$0xff]   ;;  %v1871_v60 = vld [vmem:[#allocation7 + $0x18c] ss:$16 sps:$4 sm:$0xff]   ;;  %v1866_v61 = vld [vmem:[#allocation7 + $0x180] ss:$16 sps:$4 sm:$0xff]  }
  0x5d   :  { %v1869_v62 = vld [vmem:[#allocation7 + $0x188] ss:$16 sps:$4 sm:$0xff]   ;;  %v1874_v63 = vld [vmem:[#allocation7 + $0x1a4] ss:$16 sps:$4 sm:$0xff]   ;;  %v1877_v0 = vld [vmem:[#allocation7 + $0x1ac] ss:$16 sps:$4 sm:$0xff]  }
  0x5e   :  { %1019 = vmatpush1.bf16.msra.mxu0 %v1812_v25  ;;  %v1872_v1 = vld [vmem:[#allocation7 + $0x1a0] ss:$16 sps:$4 sm:$0xff]   ;;  %v1875_v2 = vld [vmem:[#allocation7 + $0x1a8] ss:$16 sps:$4 sm:$0xff]   ;;  %v1880_v3 = vld [vmem:[#allocation7 + $0x1c4] ss:$16 sps:$4 sm:$0xff]  }
  0x5f   :  { %1101 = vmatpush1.bf16.msra.mxu1 %v1815_v26  ;;  %1020 = vmatprep.subr.bf16.mxu0 %v1820_v27  ;;  %v1883_v4 = vld [vmem:[#allocation7 + $0x1cc] ss:$16 sps:$4 sm:$0xff]   ;;  %v1878_v5 = vld [vmem:[#allocation7 + $0x1c0] ss:$16 sps:$4 sm:$0xff]   ;;  %v1881_v6 = vld [vmem:[#allocation7 + $0x1c8] ss:$16 sps:$4 sm:$0xff]  }
  0x60   :  { %1102 = vmatprep.subr.bf16.mxu1 %v1823_v28  ;;  %v1886_v7 = vld [vmem:[#allocation7 + $0x1e4] ss:$16 sps:$4 sm:$0xff]   ;;  %v1889_v8 = vld [vmem:[#allocation7 + $0x1ec] ss:$16 sps:$4 sm:$0xff]   ;;  %v1884_v9 = vld [vmem:[#allocation7 + $0x1e0] ss:$16 sps:$4 sm:$0xff]  }
  0x61   :  { %v1887_v10 = vld [vmem:[#allocation7 + $0x1e8] ss:$16 sps:$4 sm:$0xff]   ;;  %v1892_v11 = vld [vmem:[#allocation7 + $0x204] ss:$16 sps:$4 sm:$0xff]   ;;  %v1895_v12 = vld [vmem:[#allocation7 + $0x20c] ss:$16 sps:$4 sm:$0xff]  }
  0x62   :  { %1021 = vmatpush1.bf16.msra.mxu0 %v1818_v29  ;;  %v2238_v14 = vshrl.u32 %v85_v13, 7  ;;  %v2244_v16 = vld [vmem:[%s2293_s2] sm:$0xf] }
  0x63   :  { %1103 = vmatpush1.bf16.msra.mxu1 %v1821_v30  ;;  %1022 = vmatprep.subr.bf16.mxu0 %v1826_v31 }
  0x64   :  { %1104 = vmatprep.subr.bf16.mxu1 %v1829_v32  ;;  %v87_v15 = vsub.s32 0, %v2238_v14  ;;  %v91_v17 = vsub.s32 1, %v2238_v14  ;;  %v99_v18 = vsub.s32 3, %v2238_v14 }
  0x66   :  { %1023 = vmatpush1.bf16.msra.mxu0 %v1824_v33  ;;  %v88_v19 = vrot.slane %v2244_v16, %v87_v15  ;;  %v92_v20 = vrot.slane %v2244_v16, %v91_v17  ;;  %v100_v21 = vrot.slane %v2244_v16, %v99_v18 }
  0x67   :  { %1105 = vmatpush1.bf16.msra.mxu1 %v1827_v34  ;;  %1024 = vmatprep.subr.bf16.mxu0 %v1832_v35 }
  0x68   :  { %1106 = vmatprep.subr.bf16.mxu1 %v1835_v36 }
  0x6a   :  { %1025 = vmatpush1.bf16.msra.mxu0 %v1830_v37  ;;  %v1890_v37 = vld [vmem:[#allocation7 + $0x200] ss:$16 sps:$4 sm:$0xff]  }
  0x6b   :  { %1107 = vmatpush1.bf16.msra.mxu1 %v1833_v38  ;;  %1026 = vmatprep.subr.bf16.mxu0 %v1838_v39  ;;  %v1893_v38 = vld [vmem:[#allocation7 + $0x208] ss:$16 sps:$4 sm:$0xff]  }
  0x6c   :  { %1108 = vmatprep.subr.bf16.mxu1 %v1841_v40  ;;  %v1898_v40 = vld [vmem:[#allocation7 + $0x224] ss:$16 sps:$4 sm:$0xff]  }
  0x6e   :  { %1027 = vmatpush1.bf16.msra.mxu0 %v1836_v41  ;;  %v1901_v41 = vld [vmem:[#allocation7 + $0x22c] ss:$16 sps:$4 sm:$0xff]  }
  0x6f   :  { %1109 = vmatpush1.bf16.msra.mxu1 %v1839_v42  ;;  %1028 = vmatprep.subr.bf16.mxu0 %v1844_v43  ;;  %v1896_v43 = vld [vmem:[#allocation7 + $0x220] ss:$16 sps:$4 sm:$0xff]  }
  0x70   :  { %1110 = vmatprep.subr.bf16.mxu1 %v1847_v44  ;;  %v1899_v44 = vld [vmem:[#allocation7 + $0x228] ss:$16 sps:$4 sm:$0xff]  }
  0x72   :  { %1029 = vmatpush1.bf16.msra.mxu0 %v1842_v45  ;;  %v1904_v45 = vld [vmem:[#allocation7 + $0x244] ss:$16 sps:$4 sm:$0xff]  }
  0x73   :  { %1111 = vmatpush1.bf16.msra.mxu1 %v1845_v46  ;;  %1030 = vmatprep.subr.bf16.mxu0 %v1850_v47  ;;  %v1907_v46 = vld [vmem:[#allocation7 + $0x24c] ss:$16 sps:$4 sm:$0xff]   ;;  %v1902_v47 = vld [vmem:[#allocation7 + $0x240] ss:$16 sps:$4 sm:$0xff]  }
  0x74   :  { %1112 = vmatprep.subr.bf16.mxu1 %v1853_v49  ;;  %v1910_v49 = vld [vmem:[#allocation7 + $0x264] ss:$16 sps:$4 sm:$0xff]  }
  0x76   :  { %1031 = vmatpush1.bf16.msra.mxu0 %v1848_v48  ;;  %v1905_v48 = vld [vmem:[#allocation7 + $0x248] ss:$16 sps:$4 sm:$0xff]  }
  0x77   :  { %1113 = vmatpush1.bf16.msra.mxu1 %v1851_v50  ;;  %1032 = vmatprep.subr.bf16.mxu0 %v1856_v51  ;;  %v1913_v50 = vld [vmem:[#allocation7 + $0x26c] ss:$16 sps:$4 sm:$0xff]   ;;  %v1908_v51 = vld [vmem:[#allocation7 + $0x260] ss:$16 sps:$4 sm:$0xff]  }
  0x78   :  { %1114 = vmatprep.subr.bf16.mxu1 %v1859_v52  ;;  %v1911_v52 = vld [vmem:[#allocation7 + $0x268] ss:$16 sps:$4 sm:$0xff]  }
  0x7a   :  { %1033 = vmatpush1.bf16.msra.mxu0 %v1854_v53  ;;  %v1916_v53 = vld [vmem:[#allocation7 + $0x284] ss:$16 sps:$4 sm:$0xff]  }
  0x7b   :  { %1115 = vmatpush1.bf16.msra.mxu1 %v1857_v54  ;;  %1034 = vmatprep.subr.bf16.mxu0 %v1862_v55  ;;  %v1919_v54 = vld [vmem:[#allocation7 + $0x28c] ss:$16 sps:$4 sm:$0xff]   ;;  %v1914_v55 = vld [vmem:[#allocation7 + $0x280] ss:$16 sps:$4 sm:$0xff]  }
  0x7c   :  { %1116 = vmatprep.subr.bf16.mxu1 %v1865_v56  ;;  %v1917_v56 = vld [vmem:[#allocation7 + $0x288] ss:$16 sps:$4 sm:$0xff]  }
  0x7e   :  { %1035 = vmatpush1.bf16.msra.mxu0 %v1860_v57  ;;  %v1922_v57 = vld [vmem:[#allocation7 + $0x2a4] ss:$16 sps:$4 sm:$0xff]  }
  0x7f   :  { %1117 = vmatpush1.bf16.msra.mxu1 %v1863_v58  ;;  %1036 = vmatprep.subr.bf16.mxu0 %v1868_v59  ;;  %v1925_v58 = vld [vmem:[#allocation7 + $0x2ac] ss:$16 sps:$4 sm:$0xff]   ;;  %v1920_v59 = vld [vmem:[#allocation7 + $0x2a0] ss:$16 sps:$4 sm:$0xff]  }
  0x80   :  { %1118 = vmatprep.subr.bf16.mxu1 %v1871_v60  ;;  %v1923_v60 = vld [vmem:[#allocation7 + $0x2a8] ss:$16 sps:$4 sm:$0xff]  }
  0x82   :  { %1037 = vmatpush1.bf16.msra.mxu0 %v1866_v61  ;;  %v1928_v61 = vld [vmem:[#allocation7 + $0x2c4] ss:$16 sps:$4 sm:$0xff]  }
  0x83   :  { %1119 = vmatpush1.bf16.msra.mxu1 %v1869_v62  ;;  %1038 = vmatprep.subr.bf16.mxu0 %v1874_v63  ;;  %v1931_v62 = vld [vmem:[#allocation7 + $0x2cc] ss:$16 sps:$4 sm:$0xff]   ;;  %v1926_v63 = vld [vmem:[#allocation7 + $0x2c0] ss:$16 sps:$4 sm:$0xff]  }
  0x84   :  { %1120 = vmatprep.subr.bf16.mxu1 %v1877_v0  ;;  %v1929_v0 = vld [vmem:[#allocation7 + $0x2c8] ss:$16 sps:$4 sm:$0xff]  }
  0x86   :  { %1039 = vmatpush1.bf16.msra.mxu0 %v1872_v1  ;;  %v1934_v1 = vld [vmem:[#allocation7 + $0x2e4] ss:$16 sps:$4 sm:$0xff]  }
  0x87   :  { %1121 = vmatpush1.bf16.msra.mxu1 %v1875_v2  ;;  %1040 = vmatprep.subr.bf16.mxu0 %v1880_v3  ;;  %v1937_v2 = vld [vmem:[#allocation7 + $0x2ec] ss:$16 sps:$4 sm:$0xff]   ;;  %v1932_v3 = vld [vmem:[#allocation7 + $0x2e0] ss:$16 sps:$4 sm:$0xff]  }
  0x88   :  { %1122 = vmatprep.subr.bf16.mxu1 %v1883_v4  ;;  %v1935_v4 = vld [vmem:[#allocation7 + $0x2e8] ss:$16 sps:$4 sm:$0xff]  }
  0x8a   :  { %1041 = vmatpush1.bf16.msra.mxu0 %v1878_v5  ;;  %v1940_v5 = vld [vmem:[#allocation7 + $0x304] ss:$16 sps:$4 sm:$0xff]  }
  0x8b   :  { %1123 = vmatpush1.bf16.msra.mxu1 %v1881_v6  ;;  %1042 = vmatprep.subr.bf16.mxu0 %v1886_v7  ;;  %v1943_v6 = vld [vmem:[#allocation7 + $0x30c] ss:$16 sps:$4 sm:$0xff]   ;;  %v1938_v7 = vld [vmem:[#allocation7 + $0x300] ss:$16 sps:$4 sm:$0xff]  }
  0x8c   :  { %1124 = vmatprep.subr.bf16.mxu1 %v1889_v8  ;;  %v1941_v8 = vld [vmem:[#allocation7 + $0x308] ss:$16 sps:$4 sm:$0xff]  }
  0x8e   :  { %1043 = vmatpush1.bf16.msra.mxu0 %v1884_v9  ;;  %v1946_v9 = vld [vmem:[#allocation7 + $0x324] ss:$16 sps:$4 sm:$0xff]  }
  0x8f   :  { %1125 = vmatpush1.bf16.msra.mxu1 %v1887_v10  ;;  %1053 = vmatprep.subr.bf16.mxu0 %v1892_v11  ;;  %v1949_v10 = vld [vmem:[#allocation7 + $0x32c] ss:$16 sps:$4 sm:$0xff]   ;;  %v1944_v11 = vld [vmem:[#allocation7 + $0x320] ss:$16 sps:$4 sm:$0xff]  }
  0x90   :  { %1135 = vmatprep.subr.bf16.mxu1 %v1895_v12  ;;  %v1947_v12 = vld [vmem:[#allocation7 + $0x328] ss:$16 sps:$4 sm:$0xff]  }
 0x124   :  { %v166_v22 = vpop.f32.mrb[0].mxu0 }
 0x125   :  { %v167_v23 = vadd.f32 %v166_v22, %v88_v19  ;;  %v168_v24 = vpop.f32.mrb[1].mxu0  ;;  %v2257_v25 = vpop.f32.mrb[0].mxu1  ;;  %v1952_v19 = vld [vmem:[#allocation7 + $0x344] ss:$16 sps:$4 sm:$0xff]   ;;  %v1953_v22 = vld [vmem:[#allocation7 + $0x348] ss:$16 sps:$4 sm:$0xff]  }
 0x126   :  { %v169_v26 = vadd.f32 %v168_v24, %v92_v20  ;;  %v170_v27 = vpop.f32.mrb[2].mxu0  ;;  %v209_v28 = vpop.f32.mrb[1].mxu1  ;;  %v1955_v20 = vld [vmem:[#allocation7 + $0x34c] ss:$16 sps:$4 sm:$0xff]  }
 0x127   :  { %v214_v29 = vmax.f32 %v167_v23, 0.0  ;;  %v171_v30 = vpop.f32.mrb[3].mxu0  ;;  %v210_v31 = vadd.f32 %v209_v28, %v100_v21  ;;  %v211_v32 = vpop.f32.mrb[2].mxu1  ;;  %v1950_v21 = vld [vmem:[#allocation7 + $0x340] ss:$16 sps:$4 sm:$0xff]  }
 0x128   :  { %v215_v33 = vmax.f32 %v169_v26, 0.0  ;;  %v212_v34 = vpop.f32.mrb[3].mxu1  ;;  %v1958_v23 = vld [vmem:[#allocation7 + $0x364] ss:$16 sps:$4 sm:$0xff]   ;;  %v1961_v24 = vld [vmem:[#allocation7 + $0x36c] ss:$16 sps:$4 sm:$0xff]  }
 0x129   :  { %v217_v35 = vmax.f32 %v210_v31, 0.0  ;;  %v218_v39 = vpack.c.bf16 %v214_v29, %v214_v29  ;;  %v1956_v26 = vld [vmem:[#allocation7 + $0x360] ss:$16 sps:$4 sm:$0xff]   ;;  %v1959_v27 = vld [vmem:[#allocation7 + $0x368] ss:$16 sps:$4 sm:$0xff]   ;;  %v95_v32 = vsub.s32 2, %v2238_v14 }
 0x12a   :  { %v219_v36 = vpack.c.bf16 %v215_v33, %v215_v33  ;;  %v1964_v28 = vld [vmem:[#allocation7 + $0x384] ss:$16 sps:$4 sm:$0xff]   ;;  %v1967_v29 = vld [vmem:[#allocation7 + $0x38c] ss:$16 sps:$4 sm:$0xff]   ;;  %v1962_v30 = vld [vmem:[#allocation7 + $0x380] ss:$16 sps:$4 sm:$0xff]  }
 0x12b   :  { %v221_v42 = vpack.c.bf16 %v217_v35, %v217_v35  ;;  %v1965_v31 = vld [vmem:[#allocation7 + $0x388] ss:$16 sps:$4 sm:$0xff]   ;;  %v1970_v33 = vld [vmem:[#allocation7 + $0x3a4] ss:$16 sps:$4 sm:$0xff]   ;;  %v1973_v34 = vld [vmem:[#allocation7 + $0x3ac] ss:$16 sps:$4 sm:$0xff]  }
 0x12c   :  { %1044 = vmatprep.mubr.bf16.mxu0 %v219_v36  ;;  %1126 = vmatprep.mubr.bf16.mxu1 %v219_v36  ;;  %v1968_v35 = vld [vmem:[#allocation7 + $0x3a0] ss:$16 sps:$4 sm:$0xff]   ;;  %v1971_v36 = vld [vmem:[#allocation7 + $0x3a8] ss:$16 sps:$4 sm:$0xff]  }
 0x12d   :  { %1045 = vmatmul.mubr.bf16.vlgmr.msra.gmra.mrb[4].mxu0 %v218_v39  ;;  %1127 = vmatmul.mubr.bf16.vlgmr.msra.gmra.mrb[4].mxu1 %v218_v39  ;;  %v1979_v39 = vld [vmem:[#allocation7 + $0x3cc] ss:$16 sps:$4 sm:$0xff]  }
 0x12e   :  { %1054 = vmatpush1.bf16.msra.mxu0 %v1890_v37  ;;  %1136 = vmatpush1.bf16.msra.mxu1 %v1893_v38  ;;  %v96_v37 = vrot.slane %v2244_v16, %v95_v32  ;;  %v1976_v38 = vld [vmem:[#allocation7 + $0x3c4] ss:$16 sps:$4 sm:$0xff]  }
 0x12f   :  { %1055 = vmatprep.subr.bf16.mxu0 %v1898_v40  ;;  %1137 = vmatprep.subr.bf16.mxu1 %v1901_v41  ;;  %v1974_v40 = vld [vmem:[#allocation7 + $0x3c0] ss:$16 sps:$4 sm:$0xff]   ;;  %v1977_v41 = vld [vmem:[#allocation7 + $0x3c8] ss:$16 sps:$4 sm:$0xff]  }
 0x130   :  { %1085 = vmatprep.mubr.bf16.mxu0 %v221_v42  ;;  %1167 = vmatprep.mubr.bf16.mxu1 %v221_v42  ;;  %v208_v42 = vadd.f32 %v2257_v25, %v96_v37  ;;  %v1986_v16 = vld [vmem:[#allocation8 + $0x40] sm:$0xff]   ;;  %v1990_v25 = vld [vmem:[#allocation8 + $0x48] sm:$0xff]  }
 0x132   :  { %1056 = vmatpush1.bf16.msra.mxu0 %v1896_v43  ;;  %1138 = vmatpush1.bf16.msra.mxu1 %v1899_v44  ;;  %v1982_v43 = vld [vmem:[#allocation7 + $0x3e4] ss:$16 sps:$4 sm:$0xff]   ;;  %v1985_v44 = vld [vmem:[#allocation7 + $0x3ec] ss:$16 sps:$4 sm:$0xff]  }
 0x133   :  { %1057 = vmatprep.subr.bf16.mxu0 %v1904_v45  ;;  %1139 = vmatprep.subr.bf16.mxu1 %v1907_v46  ;;  %v1980_v45 = vld [vmem:[#allocation7 + $0x3e0] ss:$16 sps:$4 sm:$0xff]   ;;  %v1983_v46 = vld [vmem:[#allocation7 + $0x3e8] ss:$16 sps:$4 sm:$0xff]  }
 0x136   :  { %1058 = vmatpush1.bf16.msra.mxu0 %v1902_v47  ;;  %1140 = vmatpush1.bf16.msra.mxu1 %v1905_v48  ;;  %v216_v47 = vmax.f32 %v208_v42, 0.0  ;;  %v1987_v48 = vld [vmem:[#allocation8 + $0xc0] sm:$0xff]  }
 0x137   :  { %1059 = vmatprep.subr.bf16.mxu0 %v1910_v49  ;;  %1141 = vmatprep.subr.bf16.mxu1 %v1913_v50  ;;  %v1988_v49 = vld [vmem:[#allocation8] sm:$0xff]  }
 0x138   :  { %v1989_v50 = vld [vmem:[#allocation8 + $0x80] sm:$0xff]  }
 0x13a   :  { %1060 = vmatpush1.bf16.msra.mxu0 %v1908_v51  ;;  %1142 = vmatpush1.bf16.msra.mxu1 %v1911_v52  ;;  %v220_v51 = vpack.c.bf16 %v216_v47, %v216_v47  ;;  %v1991_v52 = vld [vmem:[#allocation8 + $0xc8] sm:$0xff]  }
 0x13b   :  { %1061 = vmatprep.subr.bf16.mxu0 %v1916_v53  ;;  %1143 = vmatprep.subr.bf16.mxu1 %v1919_v54  ;;  %v1992_v53 = vld [vmem:[#allocation8 + $0x8] sm:$0xff]  }
 0x13c   :  { %v1993_v54 = vld [vmem:[#allocation8 + $0x88] sm:$0xff]  }
 0x13e   :  { %1062 = vmatpush1.bf16.msra.mxu0 %v1914_v55  ;;  %1144 = vmatpush1.bf16.msra.mxu1 %v1917_v56  ;;  %v1994_v55 = vld [vmem:[#allocation8 + $0x50] sm:$0xff]  }
 0x13f   :  { %1063 = vmatprep.subr.bf16.mxu0 %v1922_v57  ;;  %1145 = vmatprep.subr.bf16.mxu1 %v1925_v58  ;;  %v1995_v56 = vld [vmem:[#allocation8 + $0xd0] sm:$0xff]  }
 0x140   :  { %v1996_v57 = vld [vmem:[#allocation8 + $0x10] sm:$0xff]  }
 0x141   :  { %v1997_v58 = vld [vmem:[#allocation8 + $0x90] sm:$0xff]  }
 0x142   :  { %1064 = vmatpush1.bf16.msra.mxu0 %v1920_v59  ;;  %1146 = vmatpush1.bf16.msra.mxu1 %v1923_v60  ;;  %v1998_v59 = vld [vmem:[#allocation8 + $0x58] sm:$0xff]  }
 0x143   :  { %1065 = vmatprep.subr.bf16.mxu0 %v1928_v61  ;;  %1147 = vmatprep.subr.bf16.mxu1 %v1931_v62  ;;  %v1999_v60 = vld [vmem:[#allocation8 + $0xd8] sm:$0xff]  }
 0x144   :  { %v2000_v61 = vld [vmem:[#allocation8 + $0x18] sm:$0xff]  }
 0x145   :  { %v2001_v62 = vld [vmem:[#allocation8 + $0x98] sm:$0xff]  }
 0x146   :  { %1066 = vmatpush1.bf16.msra.mxu0 %v1926_v63  ;;  %1148 = vmatpush1.bf16.msra.mxu1 %v1929_v0  ;;  %v2002_v63 = vld [vmem:[#allocation8 + $0x60] sm:$0xff]  }
 0x147   :  { %1067 = vmatprep.subr.bf16.mxu0 %v1934_v1  ;;  %1149 = vmatprep.subr.bf16.mxu1 %v1937_v2  ;;  %v2003_v0 = vld [vmem:[#allocation8 + $0xe0] sm:$0xff]  }
 0x148   :  { %v2004_v1 = vld [vmem:[#allocation8 + $0x20] sm:$0xff]  }
 0x149   :  { %v2005_v2 = vld [vmem:[#allocation8 + $0xa0] sm:$0xff]  }
 0x14a   :  { %1068 = vmatpush1.bf16.msra.mxu0 %v1932_v3  ;;  %1150 = vmatpush1.bf16.msra.mxu1 %v1935_v4  ;;  %v2006_v3 = vld [vmem:[#allocation8 + $0x68] sm:$0xff]  }
 0x14b   :  { %1069 = vmatprep.subr.bf16.mxu0 %v1940_v5  ;;  %1151 = vmatprep.subr.bf16.mxu1 %v1943_v6  ;;  %v2007_v4 = vld [vmem:[#allocation8 + $0xe8] sm:$0xff]  }
 0x14c   :  { %v2008_v5 = vld [vmem:[#allocation8 + $0x28] sm:$0xff]  }
 0x14d   :  { %v2009_v6 = vld [vmem:[#allocation8 + $0xa8] sm:$0xff]  }
 0x14e   :  { %1070 = vmatpush1.bf16.msra.mxu0 %v1938_v7  ;;  %1152 = vmatpush1.bf16.msra.mxu1 %v1941_v8  ;;  %v2010_v7 = vld [vmem:[#allocation8 + $0x70] sm:$0xff]  }
 0x14f   :  { %1071 = vmatprep.subr.bf16.mxu0 %v1946_v9  ;;  %1153 = vmatprep.subr.bf16.mxu1 %v1949_v10  ;;  %v2011_v8 = vld [vmem:[#allocation8 + $0xf0] sm:$0xff]  }
 0x150   :  { %v2012_v9 = vld [vmem:[#allocation8 + $0x30] sm:$0xff]  }
 0x151   :  { %v2013_v10 = vld [vmem:[#allocation8 + $0xb0] sm:$0xff]  }
 0x152   :  { %1072 = vmatpush1.bf16.msra.mxu0 %v1944_v11  ;;  %1154 = vmatpush1.bf16.msra.mxu1 %v1947_v12  ;;  %v2014_v11 = vld [vmem:[#allocation8 + $0x78] sm:$0xff]  }
 0x153   :  { %1073 = vmatprep.subr.bf16.mxu0 %v1952_v19  ;;  %1155 = vmatprep.subr.bf16.mxu1 %v1955_v20  ;;  %v2015_v12 = vld [vmem:[#allocation8 + $0xf8] sm:$0xff]  }
 0x154   :  { %v2016_v19 = vld [vmem:[#allocation8 + $0x38] sm:$0xff]  }
 0x155   :  { %v2017_v20 = vld [vmem:[#allocation8 + $0xb8] sm:$0xff]  }
 0x156   :  { %1074 = vmatpush1.bf16.msra.mxu0 %v1950_v21  ;;  %1156 = vmatpush1.bf16.msra.mxu1 %v1953_v22  ;;  %v350_v21 = vld [vmem:[%s2295_s4] sm:$0xf] }
 0x157   :  { %1075 = vmatprep.subr.bf16.mxu0 %v1958_v23  ;;  %1157 = vmatprep.subr.bf16.mxu1 %v1961_v24  ;;  %v355_v22 = vrot.slane %v350_v21, %v87_v15  ;;  %v363_v23 = vrot.slane %v350_v21, %v95_v32  ;;  %v359_v24 = vrot.slane %v350_v21, %v91_v17 }
 0x15a   :  { %1076 = vmatpush1.bf16.msra.mxu0 %v1956_v26  ;;  %1158 = vmatpush1.bf16.msra.mxu1 %v1959_v27  ;;  %v367_v26 = vrot.slane %v350_v21, %v99_v18 }
 0x15b   :  { %1077 = vmatprep.subr.bf16.mxu0 %v1964_v28  ;;  %1159 = vmatprep.subr.bf16.mxu1 %v1967_v29 }
 0x15e   :  { %1078 = vmatpush1.bf16.msra.mxu0 %v1962_v30  ;;  %1160 = vmatpush1.bf16.msra.mxu1 %v1965_v31 }
 0x15f   :  { %1079 = vmatprep.subr.bf16.mxu0 %v1970_v33  ;;  %1161 = vmatprep.subr.bf16.mxu1 %v1973_v34 }
 0x162   :  { %1080 = vmatpush1.bf16.msra.mxu0 %v1968_v35  ;;  %1162 = vmatpush1.bf16.msra.mxu1 %v1971_v36 }
 0x163   :  { %1081 = vmatprep.subr.bf16.mxu0 %v1976_v38  ;;  %1163 = vmatprep.subr.bf16.mxu1 %v1979_v39 }
 0x166   :  { %1082 = vmatpush1.bf16.msra.mxu0 %v1974_v40  ;;  %1164 = vmatpush1.bf16.msra.mxu1 %v1977_v41 }
 0x167   :  { %1083 = vmatprep.subr.bf16.mxu0 %v1982_v43  ;;  %1165 = vmatprep.subr.bf16.mxu1 %v1985_v44  ;;  %v1528_v43 = vand.u32 127, %v85_v13 }
 0x169   :  { %vm1529_vm2 = vcmp.lt.s32.totalorder %v1528_v43, 2 }
 0x16a   :  { %1084 = vmatpush1.bf16.msra.mxu0 %v1980_v45  ;;  %1166 = vmatpush1.bf16.msra.mxu1 %v1983_v46  ;;  %v1690_v46 = vld [vmem:[%s2297_s6] ss:$0 sm:$0xff]  ;;  %s2108_s6 = scalar_lea.vmem %s1544_s8, 128 }
 0x16b   :  { %1723 = vmatprep.subr.bf16.mxu0 %v1986_v16  ;;  %1745 = vmatprep.subr.bf16.mxu1 %v1987_v48  ;;  %p2109_p4 = scmp.ne.s32.totalorder %s1544_s8, %s2108_s6  ;;  %p2114_p6 = scmp.lt.s32.totalorder %s2108_s6, %s2108_s6 }
 0x16d   :  { %1086 = vmatmul.mubr.bf16.vlgmr.msra.gmra.mrb[4].mxu0 %v220_v51  ;;  %1168 = vmatmul.mubr.bf16.vlgmr.msra.gmra.mrb[4].mxu1 %v220_v51  ;;  %p2115_p7 = por %p2114_p6, %p2113_p5 }
 0x16e   :  { %1724 = vmatpush3.bf16.msra.mxu0 %v1988_v49  ;;  %1746 = vmatpush3.bf16.msra.mxu1 %v1989_v50 }
 0x16f   :  { %1725 = vmatprep.subr.bf16.mxu0 %v1990_v25  ;;  %1747 = vmatprep.subr.bf16.mxu1 %v1991_v52  ;;  %p2116_p8 = pnand %p2115_p7, %p2109_p4 }
 0x172   :  { %1726 = vmatpush3.bf16.msra.mxu0 %v1992_v53  ;;  %1748 = vmatpush3.bf16.msra.mxu1 %v1993_v54  ;;  %v2147_v54 = vmov 0.5  }
 0x173   :  { %1727 = vmatprep.subr.bf16.mxu0 %v1994_v55  ;;  %1749 = vmatprep.subr.bf16.mxu1 %v1995_v56  ;;  %v1530_v55 = vsel %vm1529_vm2, 1.0, %v2147_v54 }
 0x176   :  { %1728 = vmatpush3.bf16.msra.mxu0 %v1996_v57  ;;  %1750 = vmatpush3.bf16.msra.mxu1 %v1997_v58  ;;  %v1531_v58 = vsel %vm1529_vm2, 0.0, %v2147_v54 }
 0x177   :  { %1729 = vmatprep.subr.bf16.mxu0 %v1998_v59  ;;  %1751 = vmatprep.subr.bf16.mxu1 %v1999_v60 }
 0x17a   :  { %1730 = vmatpush3.bf16.msra.mxu0 %v2000_v61  ;;  %1752 = vmatpush3.bf16.msra.mxu1 %v2001_v62 }
 0x17b   :  { %1731 = vmatprep.subr.bf16.mxu0 %v2002_v63  ;;  %1753 = vmatprep.subr.bf16.mxu1 %v2003_v0 }
 0x17e   :  { %1732 = vmatpush3.bf16.msra.mxu0 %v2004_v1  ;;  %1754 = vmatpush3.bf16.msra.mxu1 %v2005_v2 }
 0x17f   :  { %1733 = vmatprep.subr.bf16.mxu0 %v2006_v3  ;;  %1755 = vmatprep.subr.bf16.mxu1 %v2007_v4 }
 0x182   :  { %1734 = vmatpush3.bf16.msra.mxu0 %v2008_v5  ;;  %1756 = vmatpush3.bf16.msra.mxu1 %v2009_v6 }
 0x183   :  { %1735 = vmatprep.subr.bf16.mxu0 %v2010_v7  ;;  %1757 = vmatprep.subr.bf16.mxu1 %v2011_v8 }
 0x186   :  { %1736 = vmatpush3.bf16.msra.mxu0 %v2012_v9  ;;  %1758 = vmatpush3.bf16.msra.mxu1 %v2013_v10 }
 0x187   :  { %1737 = vmatprep.subr.bf16.mxu0 %v2014_v11  ;;  %1759 = vmatprep.subr.bf16.mxu1 %v2015_v12 }
 0x18a   :  { %1738 = vmatpush3.bf16.msra.mxu0 %v2016_v19  ;;  %1760 = vmatpush3.bf16.msra.mxu1 %v2017_v20 }
 0x240   :  { %v1087_v27 = vpop.f32.mrb[4].mxu0  ;;  %v1169_v28 = vpop.f32.mrb[4].mxu1 }
 0x241   :  { %v1767_v29 = vadd.f32 %v1087_v27, %v355_v22  ;;  %v1769_v30 = vadd.f32 %v1169_v28, %v363_v23  ;;  %v1089_v31 = vpop.f32.mrb[5].mxu0  ;;  %v1171_v33 = vpop.f32.mrb[5].mxu1 }
 0x242   :  { %v1768_v34 = vadd.f32 %v1089_v31, %v359_v24  ;;  %v1770_v35 = vadd.f32 %v1171_v33, %v367_v26  ;;  %v1091_v36 = vpop.f32.mrb[6].mxu0  ;;  %v1173_v37 = vpop.f32.mrb[6].mxu1 }
 0x243   :  { %v1176_v15 = vmax.f32 %v1767_v29, 0.0  ;;  %v1178_v38 = vmax.f32 %v1769_v30, 0.0  ;;  %v1092_v39 = vpop.f32.mrb[7].mxu0  ;;  %v1174_v32 = vpop.f32.mrb[7].mxu1 }
 0x244   :  { %v1177_v40 = vmax.f32 %v1768_v34, 0.0  ;;  %v1179_v41 = vmax.f32 %v1770_v35, 0.0 }
 0x245   :  { %v1180_v14 = vpack.c.bf16 %v1176_v15, %v1176_v15  ;;  %v1182_v18 = vpack.c.bf16 %v1178_v38, %v1178_v38 }
 0x246   :  { %v1181_v17 = vpack.c.bf16 %v1177_v40, %v1177_v40  ;;  %v1183_v42 = vpack.c.bf16 %v1179_v41, %v1179_v41 }
 0x248   :  { %1479 = vmatprep.mubr.bf16.mxu0 %v1181_v17  ;;  %1519 = vmatprep.mubr.bf16.mxu1 %v1183_v42 }
 0x249   :  { %1480 = vmatmul.mubr.bf16.vlgmr.msra.gmra.mrb[8].mxu0 %v1180_v14  ;;  %1520 = vmatmul.mubr.bf16.vlgmr.msra.gmra.mrb[8].mxu1 %v1182_v18 }
 0x31c   :  { %v1739_v44 = vpop.f32.mrb[8].mxu0  ;;  %v1761_v45 = vpop.f32.mrb[8].mxu1 }
 0x31d   :  { %v1740_v47 = vpop.f32.mrb[9].mxu0  ;;  %v1762_v16 = vpop.f32.mrb[9].mxu1 }
 0x31e   :  { %v1741_v48 = vadd.f32 %v1740_v47, %v1739_v44  ;;  %v1763_v49 = vadd.f32 %v1762_v16, %v1761_v45  ;;  %v1742_v50 = vpop.f32.mrb[10].mxu0  ;;  %v1764_v51 = vpop.f32.mrb[10].mxu1 }
 0x31f   :  { %v1743_v25 = vpop.f32.mrb[11].mxu0  ;;  %v1765_v52 = vpop.f32.mrb[11].mxu1 }
 0x320   :  { %v1482_v53 = vadd.f32 %v1741_v48, %v1690_v46 }
 0x322   :  { %v1522_v56 = vadd.f32 %v1763_v49, %v1482_v53 }
 0x324   :  { %v1532_v13 = vmul.f32 %v1530_v55, %v1522_v56 }
 0x326   :  { %2018 = vtanh.f32 %v1532_v13 }
 0x330   :  { %v2019_v57 = vpop.eup %2018 }
 0x331   :  { %v1534_v59 = vmul.f32 %v2019_v57, %v1530_v55 }
 0x333   :  { %v1535_v60 = vadd.f32 %v1534_v59, %v1531_v58 }
 0x335   :  { %1536 = vst [vmem:[#allocation10] sm:$0xff] %v1535_v60 }
 0x336   :  { %2119 = shalt.err (!%p2116_p8)
}
 0x337   :  { %s2120_s11 = scalar_lea.hbm %s2298_s7, 128 }
 0x338   :  { %p2121_p9 = scmp.ne.s32.totalorder %s2298_s7, %s2120_s11  ;;  %p2124_p10 = scmp.lt.u32.totalorder %s2120_s11, %s2298_s7 }
 0x33a   :  { %p2126_p11 = pnand %p2124_p10, %p2121_p9 }
 0x33c   :  { %2129 = shalt.err (!%p2126_p11)
}
 0x33d   :  { %1546 = dma.vmem_to_hbm [thread:$0]  %s1544_s8, 128, %s2298_s7, [#allocation4]  }
 0x33e   :  { %2136 = dma.done.wait [#allocation4], 128  }
 0x33f   :  { %2137 = vsyncadd [#allocation4], 4294967168 }
 0x340   :  { %1550 = vsyncpa [#allocation3], 1 }
 0x341   :  { %1551 = vsyncpa [#allocation6], 1 }
 0x342   :  { %1552 = vsyncpa [#allocation9], 1 }
 0x343   :  { %1553 = vsyncpa [#allocation4], 1 }

</bundles_post_ra>
